<compile_context>
chip_gen: v5e
topology: v5e:2x2
jax: 0.10.0
libtpu: 0.0.40
codegen_flags: <defaults>
</compile_context>

<pallas_src>
import functools
import math

import numpy as np
import jax
import jax.numpy as jnp
from jax.experimental import pallas as pl
from jax.experimental.pallas import tpu as pltpu


# ----------------------------------------------------------------------------
# Pallas kernel
# ----------------------------------------------------------------------------
def _gmvae_kernel(mu_ref, sr_ref, eps_ref,            # per-sample (batch-tiled)
                  cmu_t_ref, consts_ref,              # class params (broadcast)
                  z_ref, logit_ref, qy_ref,           # outputs
                  *, latent_dim, weight, is_featExtract):
    mu = mu_ref[...].astype(jnp.float32)              # (TB, D)
    eps = eps_ref[...].astype(jnp.float32)            # (TB, D)
    sr = sr_ref[...].astype(jnp.float32)              # (TB, 2) = [logs | rho]
    logs = sr[:, 0:1]
    rho = sr[:, 1:2]
    d = float(latent_dim)

    # ---- _infer_latent: z = mu + weight * Sigma^{1/2} eps -------------------
    if is_featExtract:
        z = mu
    else:
        std = jnp.exp(0.5 * logs)
        ebar = jnp.sum(eps, axis=-1, keepdims=True) * (1.0 / d)
        a = jnp.sqrt(1.0 - rho)                        # eigval of (I - J/d) subspace
        b = jnp.sqrt(1.0 + (d - 1.0) * rho)            # eigval of 1-vector subspace
        z = mu + weight * std * (a * (eps - ebar) + b * ebar)
    z_ref[...] = z.astype(z_ref.dtype)

    # ---- _infer_class: per-class Gaussian log-likelihood --------------------
    cmu_t = cmu_t_ref[...]                             # (D, Kp)
    consts = consts_ref[...]                           # (8, Kp) stacked constants
    a_k = consts[0:1, :]                               # inv_s2 / (1-rho_k)
    b_k = consts[1:2, :]                               # inv_s2 * rho_k / ((1-rho_k)*denom_k)
    c_sum = consts[2:3, :]                             # sum_j mu_kj
    const = consts[3:4, :]                             # log-prior + norm - 0.5*a_k*||mu_k||^2

    cross = jnp.dot(z, cmu_t, preferred_element_type=jnp.float32)   # (TB, Kp) MXU
    z_sq = jnp.sum(z * z, axis=-1, keepdims=True)                   # (TB, 1)
    z_sum = jnp.sum(z, axis=-1, keepdims=True)                      # (TB, 1)
    sumdiff = z_sum - c_sum                                         # (TB, Kp)

    # logit = const - 0.5*(a_k*||z-mu_k||^2 - b_k*(sum_j (z-mu_k)_j)^2)
    logit = const - 0.5 * (a_k * (z_sq - 2.0 * cross) - b_k * sumdiff * sumdiff)
    logit_ref[...] = logit

    # softmax over (padded) classes; padded columns have const = -1e30 -> weight 0
    m = jnp.max(logit, axis=-1, keepdims=True)
    e = jnp.exp(logit - m)
    qy = e * pl.reciprocal(jnp.sum(e, axis=-1, keepdims=True), approx=True)
    qy_ref[...] = qy


# ----------------------------------------------------------------------------
# Tile-size heuristic
# ----------------------------------------------------------------------------
def _auto_tile(batch, cap=512):
    """Largest multiple of 8 dividing `batch` (<= cap); keep >=2 grid steps
    when possible so the parallel axis can shard across v7x's two cores."""
    if batch % 8 != 0:
        return batch                      # full-batch block (equals array dim)
    best = 8
    for t in range(8, min(batch, cap) + 1, 8):
        if batch % t == 0:
            best = t
    if best == batch and batch >= 16 and (batch // 2) % 8 == 0:
        best = batch // 2
    return best


# ----------------------------------------------------------------------------
# Module wrapper
# ----------------------------------------------------------------------------
class BaseGMVAEPallas:
    def __init__(self, input_size, latent_dim, n_class=10, is_featExtract=False,
                 key=jax.random.PRNGKey(0)):
        self.input_size = input_size
        self.latent_dim = latent_dim
        self.n_class = n_class
        self.is_featExtract = is_featExtract

        # _build_mu_lookup: Embedding(n_class, latent_dim), Xavier-uniform
        bound = math.sqrt(6.0 / (n_class + latent_dim))
        self.mu_lookup = jax.random.uniform(
            key, (n_class, latent_dim), jnp.float32, minval=-bound, maxval=bound)

        # _build_logs_rho_lookup: pow_exp=0 -> init_logvar = log(exp(0)^2) = 0 ; rho = 0
        self.logs_lookup = jnp.zeros((n_class, 1), jnp.float32)
        self.rho_lookup = jnp.zeros((n_class, 1), jnp.float32)

        # Class constants precomputed ONCE (folded + lane-padded to 128).
        self._k_pad = int(pl.cdiv(n_class, 128)) * 128
        self._cmu_t_pad, self._consts_pad = self._build_class_constants()

    def _build_class_constants(self):
        d = float(self.latent_dim)
        k = self.n_class
        kp = self._k_pad
        cmu = self.mu_lookup                          # (K, D)
        clogs = self.logs_lookup[:, 0]                # (K,)
        crho = self.rho_lookup[:, 0]                  # (K,)

        one_m = 1.0 - crho
        denom = 1.0 + (d - 1.0) * crho
        inv_s2 = jnp.exp(-clogs)
        a_k = inv_s2 / one_m
        b_k = inv_s2 * crho / (one_m * denom)
        c_sq = jnp.sum(cmu * cmu, axis=-1)
        c_sum = jnp.sum(cmu, axis=-1)
        logdet = d * clogs + (d - 1.0) * jnp.log(one_m) + jnp.log(denom)
        const = (-0.5 * (d * math.log(2.0 * math.pi) + logdet)
                 + math.log(1.0 / k)
                 - 0.5 * a_k * c_sq)                  # fold a_k*||mu_k||^2 here

        # lane-pad class axis to 128; padded classes get const = -1e30 (masked
        # out by softmax), a_k = b_k = c_sum = 0.
        cmu_t = jnp.zeros((self.latent_dim, kp), jnp.float32).at[:, :k].set(cmu.T)
        consts = jnp.zeros((8, kp), jnp.float32)
        consts = consts.at[3, :].set(-1e30)
        consts = consts.at[0, :k].set(a_k)
        consts = consts.at[1, :k].set(b_k)
        consts = consts.at[2, :k].set(c_sum)
        consts = consts.at[3, :k].set(const)
        return cmu_t, consts

    def forward(self, mu, logs, rho, eps, weight=1.0, tile_b=None):
        B, D = mu.shape
        K = self.n_class
        Kp = self._k_pad
        if tile_b is None:
            tile_b = _auto_tile(B)
        assert B % tile_b == 0
        grid = (B // tile_b,)

        # pack the two lane-sparse per-sample scalars into one input stream
        sr = jnp.concatenate([logs, rho], axis=-1).astype(jnp.float32)   # (B, 2)

        kernel = functools.partial(
            _gmvae_kernel, latent_dim=D,
            weight=float(weight), is_featExtract=self.is_featExtract)

        batch_spec = lambda s: pl.BlockSpec(s, lambda i: (i, 0))
        const_spec = lambda s: pl.BlockSpec(s, lambda i: (0, 0))

        z, logit_p, qy_p = pl.pallas_call(
            kernel,
            grid=grid,
            in_specs=[batch_spec((tile_b, D)),
                      batch_spec((tile_b, 2)),
                      batch_spec((tile_b, D)),
                      const_spec((D, Kp)),
                      const_spec((8, Kp))],
            out_specs=[batch_spec((tile_b, D)),
                       batch_spec((tile_b, Kp)),
                       batch_spec((tile_b, Kp))],
            out_shape=(jax.ShapeDtypeStruct((B, D), jnp.float32),
                       jax.ShapeDtypeStruct((B, Kp), jnp.float32),
                       jax.ShapeDtypeStruct((B, Kp), jnp.float32)),
            compiler_params=pltpu.CompilerParams(
                dimension_semantics=("parallel",)),
        )(mu, sr, eps, self._cmu_t_pad, self._consts_pad)

        logit = logit_p[:, :K]
        qy = qy_p[:, :K]
        # argmax moved out of the kernel (free in XLA; avoids a lane-width-1 store)
        ind = jnp.argmax(logit, axis=-1)

        # mirrors (_infer_latent -> mu, logs, rho, z) + (_infer_class -> logit, q_y, ind)
        return mu, logs, rho, z, logit, qy, ind


# ----------------------------------------------------------------------------
# Pure-JAX reference (same math) for validation
# ----------------------------------------------------------------------------
def reference_forward(model, mu, logs, rho, eps, weight=1.0):
    d = float(model.latent_dim)
    if model.is_featExtract:
        z = mu
    else:
        std = jnp.exp(0.5 * logs)
        ebar = jnp.mean(eps, axis=-1, keepdims=True)
        z = mu + weight * std * (jnp.sqrt(1.0 - rho) * (eps - ebar)
                                 + jnp.sqrt(1.0 + (d - 1.0) * rho) * ebar)
    cmu = model.mu_lookup
    clogs = model.logs_lookup[:, 0]
    crho = model.rho_lookup[:, 0]
    diff = z[:, None, :] - cmu[None, :, :]
    one_m = 1.0 - crho
    denom = 1.0 + (d - 1.0) * crho
    quad = (jnp.sum(diff * diff, -1) / one_m[None, :]
            - (crho / (one_m * denom))[None, :] * jnp.sum(diff, -1) ** 2) \
           * jnp.exp(-clogs)[None, :]
    logdet = d * clogs + (d - 1.0) * jnp.log(one_m) + jnp.log(denom)
    logit = -0.5 * (d * math.log(2 * math.pi) + logdet[None, :] + quad) \
            + math.log(1.0 / model.n_class)
    qy = jax.nn.softmax(logit, axis=-1)
    ind = jnp.argmax(qy, axis=-1)
    return z, logit, qy, ind


# ----------------------------------------------------------------------------
if __name__ == "__main__":
    B, D, K = 16, 32, 10
    key = jax.random.PRNGKey(0)
    k_mu, k_logs, k_rho, k_eps, k_param = jax.random.split(key, 5)

    enc_mu = jax.random.normal(k_mu, (B, D), jnp.float32)
    enc_logs = 0.1 * jax.random.normal(k_logs, (B, 1), jnp.float32)
    enc_rho = 0.2 * jax.random.uniform(k_rho, (B, 1), jnp.float32)   # valid corr range
    eps = jax.random.normal(k_eps, (B, D), jnp.float32)

    model = BaseGMVAEPallas(input_size=256, latent_dim=D, n_class=K,
                            is_featExtract=False, key=k_param)

    mu_o, logs_o, rho_o, z, logit, qy, ind = model.forward(enc_mu, enc_logs, enc_rho, eps)
    jax.block_until_ready((z, logit, qy, ind))

    z_r, logit_r, qy_r, ind_r = reference_forward(model, enc_mu, enc_logs, enc_rho, eps)
    np.testing.assert_allclose(np.asarray(z), np.asarray(z_r), rtol=1e-5, atol=1e-5)
    np.testing.assert_allclose(np.asarray(logit), np.asarray(logit_r), rtol=1e-4, atol=5e-4)
    # qy uses the EUP approximate reciprocal for the softmax denominator
    np.testing.assert_allclose(np.asarray(qy), np.asarray(qy_r), rtol=5e-3, atol=1e-3)
    assert np.array_equal(np.asarray(ind), np.asarray(ind_r))

    print("KERNEL_OK")
</pallas_src>

<mosaic_0001>
module attributes {stable_mosaic.version = 11 : i64} {
  func.func @_gmvae_kernel(%arg0: i32, %arg1: memref<8x32xf32, #tpu.memory_space<vmem>>, %arg2: memref<8x2xf32, #tpu.memory_space<vmem>>, %arg3: memref<8x32xf32, #tpu.memory_space<vmem>>, %arg4: memref<32x128xf32, #tpu.memory_space<vmem>>, %arg5: memref<8x128xf32, #tpu.memory_space<vmem>>, %arg6: memref<8x32xf32, #tpu.memory_space<vmem>>, %arg7: memref<8x128xf32, #tpu.memory_space<vmem>>, %arg8: memref<8x128xf32, #tpu.memory_space<vmem>>) attributes {dimension_semantics = [#tpu.dimension_semantics<parallel>], iteration_bounds = array<i64: 2>, scalar_prefetch = 0 : i64, scratch_operands = 0 : i64, tpu.core_type = #tpu.core_type<tc>, window_params = [{transform_indices = @transform_0, window_bounds = array<i64: 8, 32>}, {transform_indices = @transform_1, window_bounds = array<i64: 8, 2>}, {transform_indices = @transform_2, window_bounds = array<i64: 8, 32>}, {pipeline_mode = #tpu.pipeline_mode<synchronous>, transform_indices = @transform_3, window_bounds = array<i64: 32, 128>}, {pipeline_mode = #tpu.pipeline_mode<synchronous>, transform_indices = @transform_4, window_bounds = array<i64: 8, 128>}, {transform_indices = @transform_5, window_bounds = array<i64: 8, 32>}, {transform_indices = @transform_6, window_bounds = array<i64: 8, 128>}, {transform_indices = @transform_7, window_bounds = array<i64: 8, 128>}]} {
    %c0 = arith.constant 0 : index
    %c0_0 = arith.constant 0 : index
    %0 = vector.load %arg1[%c0, %c0_0] : memref<8x32xf32, #tpu.memory_space<vmem>>, vector<8x32xf32>
    %c0_1 = arith.constant 0 : index
    %c0_2 = arith.constant 0 : index
    %1 = vector.load %arg3[%c0_1, %c0_2] : memref<8x32xf32, #tpu.memory_space<vmem>>, vector<8x32xf32>
    %c0_3 = arith.constant 0 : index
    %c0_4 = arith.constant 0 : index
    %2 = vector.load %arg2[%c0_3, %c0_4] : memref<8x2xf32, #tpu.memory_space<vmem>>, vector<8x2xf32>
    %3 = vector.extract_strided_slice %2 {offsets = [0, 0], sizes = [8, 1], strides = [1, 1]} : vector<8x2xf32> to vector<8x1xf32>
    %4 = vector.extract_strided_slice %2 {offsets = [0, 1], sizes = [8, 1], strides = [1, 1]} : vector<8x2xf32> to vector<8x1xf32>
    %cst = arith.constant 5.000000e-01 : f32
    %5 = vector.broadcast %cst : f32 to vector<8x1xf32>
    %6 = arith.mulf %5, %3 : vector<8x1xf32>
    %7 = math.exp %6 : vector<8x1xf32>
    %cst_5 = arith.constant dense<0.000000e+00> : vector<8xf32>
    %8 = vector.multi_reduction <add>, %1, %cst_5 [1] : vector<8x32xf32> to vector<8xf32>
    %9 = vector.shape_cast %8 : vector<8xf32> to vector<8x1xf32>
    %cst_6 = arith.constant 3.125000e-02 : f32
    %10 = vector.broadcast %cst_6 : f32 to vector<8x1xf32>
    %11 = arith.mulf %9, %10 : vector<8x1xf32>
    %cst_7 = arith.constant 1.000000e+00 : f32
    %12 = vector.broadcast %cst_7 : f32 to vector<8x1xf32>
    %13 = arith.subf %12, %4 : vector<8x1xf32>
    %14 = math.sqrt %13 : vector<8x1xf32>
    %cst_8 = arith.constant 3.100000e+01 : f32
    %15 = vector.broadcast %cst_8 : f32 to vector<8x1xf32>
    %16 = arith.mulf %15, %4 : vector<8x1xf32>
    %cst_9 = arith.constant 1.000000e+00 : f32
    %17 = vector.broadcast %cst_9 : f32 to vector<8x1xf32>
    %18 = arith.addf %17, %16 : vector<8x1xf32>
    %19 = math.sqrt %18 : vector<8x1xf32>
    %cst_10 = arith.constant 1.000000e+00 : f32
    %20 = vector.broadcast %cst_10 : f32 to vector<8x1xf32>
    %21 = arith.mulf %20, %7 : vector<8x1xf32>
    %22 = vector.broadcast %11 : vector<8x1xf32> to vector<8x32xf32>
    %23 = arith.subf %1, %22 : vector<8x32xf32>
    %24 = vector.broadcast %14 : vector<8x1xf32> to vector<8x32xf32>
    %25 = arith.mulf %24, %23 : vector<8x32xf32>
    %26 = arith.mulf %19, %11 : vector<8x1xf32>
    %27 = vector.broadcast %26 : vector<8x1xf32> to vector<8x32xf32>
    %28 = arith.addf %25, %27 : vector<8x32xf32>
    %29 = vector.broadcast %21 : vector<8x1xf32> to vector<8x32xf32>
    %30 = arith.mulf %29, %28 : vector<8x32xf32>
    %31 = arith.addf %0, %30 : vector<8x32xf32>
    %c0_11 = arith.constant 0 : index
    %c0_12 = arith.constant 0 : index
    %32 = vector.load %arg6[%c0_11, %c0_12] : memref<8x32xf32, #tpu.memory_space<vmem>>, vector<8x32xf32>
    tpu.vector_store %arg6[%c0_11, %c0_12], %31 {strides = array<i32>} : memref<8x32xf32, #tpu.memory_space<vmem>>, vector<8x32xf32>,
    %c0_13 = arith.constant 0 : index
    %c0_14 = arith.constant 0 : index
    %33 = vector.load %arg4[%c0_13, %c0_14] : memref<32x128xf32, #tpu.memory_space<vmem>>, vector<32x128xf32>
    %c0_15 = arith.constant 0 : index
    %c0_16 = arith.constant 0 : index
    %34 = vector.load %arg5[%c0_15, %c0_16] : memref<8x128xf32, #tpu.memory_space<vmem>>, vector<8x128xf32>
    %35 = vector.extract_strided_slice %34 {offsets = [0, 0], sizes = [1, 128], strides = [1, 1]} : vector<8x128xf32> to vector<1x128xf32>
    %36 = vector.extract_strided_slice %34 {offsets = [1, 0], sizes = [1, 128], strides = [1, 1]} : vector<8x128xf32> to vector<1x128xf32>
    %37 = vector.extract_strided_slice %34 {offsets = [2, 0], sizes = [1, 128], strides = [1, 1]} : vector<8x128xf32> to vector<1x128xf32>
    %38 = vector.extract_strided_slice %34 {offsets = [3, 0], sizes = [1, 128], strides = [1, 1]} : vector<8x128xf32> to vector<1x128xf32>
    %cst_17 = arith.constant dense<0.000000e+00> : vector<8x128xf32>
    %39 = tpu.matmul %31, %33, %cst_17 {dimension_numbers = #tpu.dot_dimension_numbers<[1], [0], [0], [1], [0, 0, 1, 1], [], []>} : vector<8x32xf32>, vector<32x128xf32>, vector<8x128xf32> -> vector<8x128xf32>
    %40 = arith.mulf %31, %31 : vector<8x32xf32>
    %cst_18 = arith.constant dense<0.000000e+00> : vector<8xf32>
    %41 = vector.multi_reduction <add>, %40, %cst_18 [1] : vector<8x32xf32> to vector<8xf32>
    %42 = vector.shape_cast %41 : vector<8xf32> to vector<8x1xf32>
    %cst_19 = arith.constant dense<0.000000e+00> : vector<8xf32>
    %43 = vector.multi_reduction <add>, %31, %cst_19 [1] : vector<8x32xf32> to vector<8xf32>
    %44 = vector.shape_cast %43 : vector<8xf32> to vector<8x1xf32>
    %45 = vector.broadcast %44 : vector<8x1xf32> to vector<8x128xf32>
    %46 = vector.broadcast %37 : vector<1x128xf32> to vector<8x128xf32>
    %47 = arith.subf %45, %46 : vector<8x128xf32>
    %cst_20 = arith.constant 2.000000e+00 : f32
    %48 = vector.broadcast %cst_20 : f32 to vector<8x128xf32>
    %49 = arith.mulf %48, %39 : vector<8x128xf32>
    %50 = vector.broadcast %42 : vector<8x1xf32> to vector<8x128xf32>
    %51 = arith.subf %50, %49 : vector<8x128xf32>
    %52 = vector.broadcast %35 : vector<1x128xf32> to vector<8x128xf32>
    %53 = arith.mulf %52, %51 : vector<8x128xf32>
    %54 = vector.broadcast %36 : vector<1x128xf32> to vector<8x128xf32>
    %55 = arith.mulf %54, %47 : vector<8x128xf32>
    %56 = arith.mulf %55, %47 : vector<8x128xf32>
    %57 = arith.subf %53, %56 : vector<8x128xf32>
    %cst_21 = arith.constant 5.000000e-01 : f32
    %58 = vector.broadcast %cst_21 : f32 to vector<8x128xf32>
    %59 = arith.mulf %58, %57 : vector<8x128xf32>
    %60 = vector.broadcast %38 : vector<1x128xf32> to vector<8x128xf32>
    %61 = arith.subf %60, %59 : vector<8x128xf32>
    %c0_22 = arith.constant 0 : index
    %c0_23 = arith.constant 0 : index
    %62 = vector.load %arg7[%c0_22, %c0_23] : memref<8x128xf32, #tpu.memory_space<vmem>>, vector<8x128xf32>
    tpu.vector_store %arg7[%c0_22, %c0_23], %61 {strides = array<i32>} : memref<8x128xf32, #tpu.memory_space<vmem>>, vector<8x128xf32>,
    %cst_24 = arith.constant dense<0xFF800000> : vector<8xf32>
    %63 = vector.multi_reduction <maximumf>, %61, %cst_24 [1] : vector<8x128xf32> to vector<8xf32>
    %64 = vector.shape_cast %63 : vector<8xf32> to vector<8x1xf32>
    %65 = vector.broadcast %64 : vector<8x1xf32> to vector<8x128xf32>
    %66 = arith.subf %61, %65 : vector<8x128xf32>
    %67 = math.exp %66 : vector<8x128xf32>
    %cst_25 = arith.constant dense<0.000000e+00> : vector<8xf32>
    %68 = vector.multi_reduction <add>, %67, %cst_25 [1] : vector<8x128xf32> to vector<8xf32>
    %69 = vector.shape_cast %68 : vector<8xf32> to vector<8x1xf32>
    %70 = tpu.reciprocal %69 {approx = true} : vector<8x1xf32> -> vector<8x1xf32>
    %71 = vector.broadcast %70 : vector<8x1xf32> to vector<8x128xf32>
    %72 = arith.mulf %67, %71 : vector<8x128xf32>
    %c0_26 = arith.constant 0 : index
    %c0_27 = arith.constant 0 : index
    %73 = vector.load %arg8[%c0_26, %c0_27] : memref<8x128xf32, #tpu.memory_space<vmem>>, vector<8x128xf32>
    tpu.vector_store %arg8[%c0_26, %c0_27], %72 {strides = array<i32>} : memref<8x128xf32, #tpu.memory_space<vmem>>, vector<8x128xf32>,
    return
  }
  func.func @transform_0(%arg0: i32) -> (i32, i32) {
    %c0_i32 = arith.constant 0 : i32
    %c0_i32_0 = arith.constant 0 : i32
    return %arg0, %c0_i32 : i32, i32
  }
  func.func @transform_1(%arg0: i32) -> (i32, i32) {
    %c0_i32 = arith.constant 0 : i32
    %c0_i32_0 = arith.constant 0 : i32
    return %arg0, %c0_i32 : i32, i32
  }
  func.func @transform_2(%arg0: i32) -> (i32, i32) {
    %c0_i32 = arith.constant 0 : i32
    %c0_i32_0 = arith.constant 0 : i32
    return %arg0, %c0_i32 : i32, i32
  }
  func.func @transform_3(%arg0: i32) -> (i32, i32) {
    %c0_i32 = arith.constant 0 : i32
    %c0_i32_0 = arith.constant 0 : i32
    %c0_i32_1 = arith.constant 0 : i32
    return %c0_i32, %c0_i32_0 : i32, i32
  }
  func.func @transform_4(%arg0: i32) -> (i32, i32) {
    %c0_i32 = arith.constant 0 : i32
    %c0_i32_0 = arith.constant 0 : i32
    %c0_i32_1 = arith.constant 0 : i32
    return %c0_i32, %c0_i32_0 : i32, i32
  }
  func.func @transform_5(%arg0: i32) -> (i32, i32) {
    %c0_i32 = arith.constant 0 : i32
    %c0_i32_0 = arith.constant 0 : i32
    return %arg0, %c0_i32 : i32, i32
  }
  func.func @transform_6(%arg0: i32) -> (i32, i32) {
    %c0_i32 = arith.constant 0 : i32
    %c0_i32_0 = arith.constant 0 : i32
    return %arg0, %c0_i32 : i32, i32
  }
  func.func @transform_7(%arg0: i32) -> (i32, i32) {
    %c0_i32 = arith.constant 0 : i32
    %c0_i32_0 = arith.constant 0 : i32
    return %arg0, %c0_i32 : i32, i32
  }
}

</mosaic_0001>

<bundles_post_ra>
// kernel: tpu_custom_call.1
= control target key start
LH: loop header
LB: loop body
LE: loop exit
PB: predicated region body
PF: predicated region fallthrough
CT: control target
= control target key end

     0   :  { %s1331_s0 = inlined_call_operand.vmem [shape: f32[16,32], index: 0, kind: input, shape index: {}]   ;;  %s1332_s1 = inlined_call_operand.vmem [shape: f32[16,2], index: 1, kind: input, shape index: {}]   ;;  %s1333_s2 = inlined_call_operand.hbm [shape: f32[16,32], index: 2, kind: input, shape index: {}]   ;;  %s1334_s3 = inlined_call_operand.hbm [shape: f32[32,128], index: 3, kind: input, shape index: {}]   ;;  %s1335_s4 = inlined_call_operand.hbm [shape: f32[8,128], index: 4, kind: input, shape index: {}]   ;;  %s1336_s5 = inlined_call_operand.hbm [shape: f32[16,32], index: 5, kind: output, shape index: {0}]   ;;  %s1337_s6 = inlined_call_operand.hbm [shape: f32[16,128], index: 6, kind: output, shape index: {1}]   ;;  %s1338_s7 = inlined_call_operand.hbm [shape: f32[16,128], index: 7, kind: output, shape index: {2}]  }
   0x1   :  { %1341 = sst [smem:[#allocation16_spill]] %s1334_s3 }
   0x2   :  { %1342 = sst [smem:[#allocation17_spill]] %s1335_s4 }
   0x3   :  { %13 = vsyncpa [#allocation3], 0 }
   0x4   :  { %15 = vsyncpa [#allocation3 + $0x1], 0 }
   0x5   :  { %16 = vsyncpa [#allocation6], 0 }
   0x6   :  { %17 = vsyncpa [#allocation4], 0 }
   0x7   :  { %19 = vsyncpa [#allocation4 + $0x1], 0 }
   0x8   :  { %20 = vsyncpa [#allocation10], 0 }
   0x9   :  { %22 = vsyncpa [#allocation10 + $0x1], 0  ;;  %s1116_s24 = smov 0   ;;  %s1118_s25 = smov 0  }
   0xa   :  { %s1120_s26 = smov 0   ;;  %s1122_s27 = smov 0  }
   0xb LB: > { %s1343_s3 = sld [smem:[#allocation16_spill]]  ;;  %s1140_s8 = sadd.s32 4294967295, %s1068_s27   ;;  %s1068_s27 = sphi %s1122_s27, %s1357_s27   ;;  %s1064_s26 = sphi %s1120_s26, %s1356_s26   ;;  %s1060_s25 = sphi %s1118_s25, %s1355_s25   ;;  %s1056_s24 = sphi %s1116_s24, %s1354_s24  }
   0xc   : > { %p729_p0 = scmp.ge.s32.totalorder %s1068_s27, 1  ;;  %p101_p1 = scmp.eq.s32.totalorder %s1140_s8, 0 }
   0xd   : > { %p231_p2 = scmp.lt.s32.totalorder %s1068_s27, 3  ;;  %s1070_s10 = smov [#allocation5]  }
   0xe   : > { %s244_s11 = sshll.u32 %s1070_s10, 4  ;;  %s1345_s4 = sld [smem:[#allocation17_spill]]  ;;  %s245_s11 = int_to_ptr.vmem [resolvable:$true] %s244_s11 }
   0xf   : > { %p1145_p3 = pnand %p729_p0, %p231_p2  ;;  %s1071_s15 = smov [#allocation7]  }
  0x10   : > { %s259_s16 = sshll.u32 %s1071_s15, 4  ;;  %s1072_s17 = smov 128   ;;  %s260_s16 = int_to_ptr.vmem [resolvable:$true] %s259_s16 }
  0x11   : > { %s242_s30 = sshll.u32 %s1343_s3, 4  ;;  %p769_p4 = pneg %p1145_p3  ;;  %s243_s30 = int_to_ptr.hbm [resolvable:$true] %s242_s30 }
  0x12   : > { %s1073_s18 = smov 8   ;;  %s1339_s19 = sadd.s32 4294967294, %s1068_s27  }
  0x13   : > { %p770_p6 = pnand %p769_p4, %p101_p1  ;;  %s1159_s20 = sadd.s32 1, %s1068_s27  }
  0x14   : > { %s257_s14 = sshll.u32 %s1345_s4, 4  ;;  %s84_s21 = ssub.s32 %s1068_s27, %s1159_s20  ;;  %s258_s14 = int_to_ptr.hbm [resolvable:$true] %s257_s14 }
  0x15   : > { %772 = dma.hbm_to_vmem [thread:$0]  (!%p770_p6), %s243_s30, 512, %s245_s11, [#allocation6], %s1072_s17, %s1072_s17, %s1073_s18  }
  0x16   : > { %775 = dma.hbm_to_vmem [thread:$0]  (!%p770_p6), %s258_s14, 128, %s260_s16, [#allocation6]  }
  0x17   : > { %s87_s22 = sadd.s32 1, %s1064_s26  ;;  %p85_p7 = scmp.eq.s32.totalorder %s84_s21, 0 }
  0x18   : > { %p94_p8 = scmp.ne.s32.totalorder %s1064_s26, %s1060_s25  ;;  %p95_p9 = scmp.eq.s32.totalorder %s1068_s27, 0 }
  0x19   : > { %p100_p10 = scmp.ne.s32.totalorder %s1060_s25, %s1056_s24  ;;  %p166_p13 = scmp.eq.s32.totalorder %s1140_s8, 1 }
  0x1a   : > { %s1170_s23 = scalar_select %p85_p7, %s1064_s26, %s87_s22  }
  0x1b   : > { %p1172_p11 = por %p95_p9, %p94_p8  ;;  %p1178_p12 = por %p101_p1, %p100_p10 }
  0x1c   : > { %p172_p0 = scmp.eq.s32.totalorder %s1339_s19, 1  ;;  %p792_p2 = scmp.lt.s32.totalorder %s1068_s27, 2 }
  0x1d   : > { %s284_s30 = sand.u32 1, %s1064_s26   ;;  %p1187_p4 = por %p166_p13, %p94_p8 }
  0x1e   : > { %p1191_p6 = por %p172_p0, %p100_p10  ;;  %s733_s12 = sshll.u32 %s284_s30, 3 }
  0x1f   : > { %s734_s13 = sshll.u32 %s1068_s27, 3  ;;  %s288_s17 = scalar_lea.vmem [#allocation2], %s733_s12 }
  0x20   : > { %s292_s16 = scalar_lea.hbm %s1333_s2, %s734_s13  ;;  %s296_s18 = sshll.u32 %s288_s17, 4  ;;  %s297_s18 = int_to_ptr.vmem [resolvable:$true] %s296_s18 }
  0x21   : > { %s294_s21 = sshll.u32 %s292_s16, 4  ;;  %p1201_p7 = pnand %p792_p2, %p1172_p11  ;;  %s295_s21 = int_to_ptr.hbm [resolvable:$true] %s294_s21 }
  0x22   : > { %s285_s19 = scalar_lea.sflag [#allocation3], %s284_s30  ;;  %s908_s3 = sshra.s32 %s295_s21, 4  ;;  %s909_s3 = int_to_ptr.hbm [resolvable:$true] %s908_s3 }
  0x23   : > { %s910_s4 = scalar_lea.hbm %s909_s3, 8  ;;  %p912_p9 = pneg %p1201_p7 }
  0x24   : > { %p911_p8 = scmp.ne.s32.totalorder %s909_s3, %s910_s4  ;;  %s915_s14 = scalar_lea.hbm %s1333_s2, 16 }
  0x25   : > { %p916_p11 = scmp.lt.s32.totalorder %s909_s3, %s1333_s2  ;;  %p917_p0 = scmp.lt.s32.totalorder %s915_s14, %s910_s4 }
  0x26   : > { %p913_p10 = pnand %p912_p9, %p911_p8 }
  0x27   : > { %p918_p2 = por %p917_p0, %p916_p11 }
  0x28   : > { %p914_p13 = pneg %p913_p10 }
  0x2a   : > { %p919_p5 = pnand %p918_p2, %p914_p13 }
  0x2c   : > { %922 = shalt.err (!%p919_p5)
}
  0x2d   : > { %779 = dma.hbm_to_vmem [thread:$0]  (!%p1201_p7), %s295_s21, 128, %s297_s18, %s285_s19  }
  0x2e   : > { %305 = sbr.rel (%p1145_p3) target bundleno = 698 (0x2ba), region = 40  ;;  %s1218_s30 = sand.u32 (!%p1145_p3), 1, %s1060_s25  }
  0x2f   : > { %s1221_s16 = sshll.u32 (!%p1145_p3), %s1218_s30, 3  ;;  %s308_s3 = scalar_lea.sflag (!%p1145_p3), [#allocation3], %s1218_s30 }
  0x30   : > { %s311_s4 = scalar_lea.vmem (!%p1145_p3), [#allocation2], %s1221_s16 }
  0x33   : > { %1039 = dma.done.wait (%p1178_p12), %s308_s3, 128  }
  0x34   : > { %1041 = vsyncadd (%p1178_p12), %s308_s3, 4294967168 }
  0x35   : > { %1043 = dma.done.wait (%p101_p1), [#allocation6], 640  }
  0x36   : > { %1045 = vsyncadd (%p101_p1), [#allocation6], 4294966656  ;;  %p371_p3 = scmp.lt.s32.totalorder %s1140_s8, 1  ;;  %v1074_v0 = vmov 1   ;;  %vm385_vm0 = vcmask 261120   ;;  %v380_v1 = vld [vmem:[%s311_s4] sm:$0xff] }
  0x37   : > { %834 = vset.pattern.permute.xlu0 %v1074_v0  ;;  %835 = vset.pattern.permute.xlu1 %v1074_v0  ;;  %v386_v3 = vsel %vm385_vm0, %v380_v1, 0.0  ;;  %v1075_v19 = vmov 0   ;;  %v442_v34 = vld [vmem:[#allocation5 + $0x18] sm:$0xff]  ;;  %v441_v35 = vld [vmem:[#allocation5 + $0x10] sm:$0xff]  ;;  %v440_v36 = vld [vmem:[#allocation5 + $0x8] sm:$0xff]  ;;  %s1340_s13 = scalar_lea.vmem [#allocation8], %s1221_s16 }
  0x38   : > { %s1235_s9 = scalar_select %p371_p3, %s1140_s8, 1  ;;  %387 = vadd.xlane.f32.xlu0 %v386_v3  ;;  %459 = vmatpush.msra.mxu0 %v442_v34  ;;  %v439_v37 = vld [vmem:[#allocation5] sm:$0xff] }
  0x39   : > { %v443_v50 = vld [vmem:[#allocation7] sm:$0xff]  ;;  %s363_s14 = scalar_lea.vmem [#allocation9], %s1221_s16  ;;  %s1258_s15 = sshll.u32 %s1140_s8, 3 }
  0x3a   : > { %s742_s19 = sshll.u32 %s1235_s9, 3  ;;  %460 = vmatpush.msra.mxu0 %v441_v35  ;;  %v474_v52 = vperm.slane %v443_v50, 2  ;;  %v480_v53 = vperm.slane %v443_v50, 1  ;;  %v478_v58 = vperm.slane %v443_v50, 0  ;;  %v485_v0 = vperm.slane %v443_v50, 3  ;;  %s533_s4 = scalar_lea.hbm %s1337_s6, %s1258_s15 }
  0x3b   : > { %s378_s18 = scalar_lea.vmem %s1332_s1, %s742_s19  ;;  %s374_s12 = scalar_lea.vmem %s1331_s0, %s742_s19 }
  0x3c   : > { %v381_v2 = vld [vmem:[%s378_s18] sm:$0xff]  ;;  %461 = vmatpush.msra.mxu0 %v440_v36  ;;  %s503_s9 = sand.u32 1, %s1140_s8   ;;  %s535_s19 = sshll.u32 %s363_s14, 4  ;;  %s536_s19 = int_to_ptr.vmem [resolvable:$true] %s535_s19 }
  0x3d   : > { %v390_v4 = vsub.f32 1.0, %v381_v2  ;;  %v403_v15 = vmul.f32 31.0, %v381_v2  ;;  %v382_v27 = vmul.f32 0.5, %v381_v2  ;;  %v379_v44 = vld [vmem:[%s374_s12] sm:$0xff]  ;;  %s537_s29 = sshll.u32 %s533_s4, 4  ;;  %s519_s21 = scalar_lea.hbm %s1336_s5, %s1258_s15  ;;  %s538_s29 = int_to_ptr.hbm [resolvable:$true] %s537_s29 }
  0x3e   : > { %462 = vmatpush.msra.mxu0 %v439_v37  ;;  %s1269_s22 = scalar_lea.sflag [#allocation10], %s503_s9  ;;  %s952_s12 = sshra.s32 %s538_s29, 4  ;;  %s953_s12 = int_to_ptr.hbm [resolvable:$true] %s952_s12 }
  0x3f   : > { %838 = vrsqrt.f32 %v390_v4  ;;  %vm398_vm1 = vcmp.eq.f32.partialorder %v390_v4, inf  ;;  %v401_v11 = vand.u32 2147483648, %v390_v4  ;;  %vm400_vm2 = vcmp.eq.f32.partialorder %v390_v4, 0.0  ;;  %p959_p7 = scmp.lt.s32.totalorder %s953_s12, %s1337_s6 }
  0x40   : > { %v404_v16 = vadd.f32 1.0, %v403_v15  ;;  %v383_v31 = vmul.f32 1.442695, %v382_v27 }
  0x42   : > { %840 = vrsqrt.f32 %v404_v16  ;;  %vm412_vm3 = vcmp.eq.f32.partialorder %v404_v16, inf  ;;  %v415_v25 = vand.u32 2147483648, %v404_v16  ;;  %vm414_vm4 = vcmp.eq.f32.partialorder %v404_v16, 0.0 }
  0x43   : > { %842 = vpow2.f32 %v383_v31 }
  0x45   : > { %v839_v5 = vpop.eup %838 }
  0x46   : > { %v392_v6 = vmul.f32 %v839_v5, %v390_v4 }
  0x48   : > { %v393_v7 = vmul.f32 %v839_v5, %v392_v6  ;;  %v841_v17 = vpop.eup %840 }
  0x49   : > { %v406_v18 = vmul.f32 %v841_v17, %v404_v16  ;;  %v843_v33 = vpop.eup %842 }
  0x4a   : > { %v394_v8 = vmul.f32 0.5, %v393_v7 }
  0x4b   : > { %v407_v20 = vmul.f32 %v841_v17, %v406_v18 }
  0x4c   : > { %v395_v9 = vsub.f32 1.5, %v394_v8 }
  0x4d   : > { %v408_v21 = vmul.f32 0.5, %v407_v20 }
  0x4e   : > { %v396_v10 = vmul.f32 %v839_v5, %v395_v9 }
  0x4f   : > { %v409_v22 = vsub.f32 1.5, %v408_v21 }
  0x50   : > { %v397_v12 = vmul.f32 %v396_v10, %v390_v4 }
  0x51   : > { %v410_v23 = vmul.f32 %v841_v17, %v409_v22 }
  0x52   : > { %v399_v13 = vsel %vm398_vm1, %v390_v4, %v397_v12 }
  0x53   : > { %v402_v14 = vsel %vm400_vm2, %v401_v11, %v399_v13  ;;  %v411_v24 = vmul.f32 %v410_v23, %v404_v16 }
  0x54   : > { %420 = vperm.xlu0 %834, %v402_v14  }
  0x55   : > { %v413_v26 = vsel %vm412_vm3, %v404_v16, %v411_v24 }
  0x56   : > { %v416_v29 = vsel %vm414_vm4, %v415_v25, %v413_v26 }
  0x5c   : > { %837 = vset.pattern.permute.xlu0 %v1075_v19 }
  0xab   : > { %v388_v28 = vpop.xlane.xlu0 %387 }
  0xac   : > { %v389_v30 = vmul.f32 0.03125, %v388_v28 }
  0xae   : > { %v424_v32 = vmul.f32 %v416_v29, %v389_v30  ;;  %v417_v40 = vsub.f32 %v380_v1, %v389_v30 }
  0xb0   : > { %427 = vperm.xlu1 %835, %v424_v32  }
  0xb8   : > { %836 = vset.pattern.permute.xlu1 %v1075_v19 }
  0xb9   : > { %433 = vperm.xlu1 %836, %v843_v33  }
  0xc6   : > { %v421_v39 = vpop.permute.xlu0 %420 }
  0xc7   : > { %v423_v41 = vmul.f32 %v421_v39, %v417_v40 }
 0x122   : > { %v428_v38 = vpop.permute.xlu1 %427 }
 0x123   : > { %v430_v42 = vadd.f32 %v428_v38, %v423_v41 }
 0x12b   : > { %v434_v43 = vpop.permute.xlu1 %433 }
 0x12c   : > { %v436_v45 = vmul.f32 %v434_v43, %v430_v42 }
 0x12e   : > { %v437_v46 = vadd.f32 %v436_v45, %v379_v44 }
 0x130   : > { %744 = vmatmul.msk.f32.vlgmr.msra.gmra.mxu0 %vm385_vm0, %v437_v46  ;;  %v471_v47 = vsel %vm385_vm0, %v437_v46, 0.0  ;;  %438 = vst.msk [vmem:[%s1340_s13] sm:$0xff] %vm385_vm0, %v437_v46  ;;  %v467_v48 = vmul.f32 %v437_v46, %v437_v46  ;;  %s954_s13 = scalar_lea.hbm %s953_s12, 8 }
 0x131   : > { %472 = vadd.xlane.f32.xlu2 %v471_v47  ;;  %p955_p1 = scmp.ne.s32.totalorder %s953_s12, %s954_s13 }
 0x132   : > { %v468_v49 = vsel %vm385_vm0, %v467_v48, 0.0 }
 0x133   : > { %p956_p5 = pnand %p955_p1, %p1187_p4 }
 0x135   : > { %p957_p12 = pneg %p956_p5 }
 0x139   : > { %469 = vadd.xlane.f32.xlu2 %v468_v49 }
 0x1a4   : > { %v473_v51 = vpop.xlane.xlu2 %472 }
 0x1a5   : > { %v475_v54 = vsub.f32 %v473_v51, %v474_v52 }
 0x1a7   : > { %v481_v56 = vmul.f32 %v480_v53, %v475_v54 }
 0x1a9   : > { %v482_v61 = vmul.f32 %v481_v56, %v475_v54 }
 0x1ac   : > { %v470_v59 = vpop.xlane.xlu2 %469 }
 0x1ad   : > { %v464_v55 = vpop.f32.mrf.mxu0 }
 0x1ae   : > { %v476_v57 = vmul.f32 2.0, %v464_v55 }
 0x1b0   : > { %v477_v60 = vsub.f32 %v470_v59, %v476_v57 }
 0x1b2   : > { %v479_v62 = vmul.f32 %v478_v58, %v477_v60 }
 0x1b4   : > { %v483_v63 = vsub.f32 %v479_v62, %v482_v61 }
 0x1b6   : > { %v484_v1 = vmul.f32 0.5, %v483_v63 }
 0x1b8   : > { %v486_v2 = vsub.f32 %v485_v0, %v484_v1 }
 0x1ba   : > { %488 = vmax.xlane.f32.xlu1 %v486_v2  ;;  %487 = vst [vmem:[%s363_s14] sm:$0xff] %v486_v2  ;;  %s958_s14 = scalar_lea.hbm %s1337_s6, 16 }
 0x1bb   : > { %p960_p8 = scmp.lt.s32.totalorder %s958_s14, %s954_s13 }
 0x1bd   : > { %p961_p9 = por %p960_p8, %p959_p7 }
 0x1bf   : > { %p962_p10 = pnand %p961_p9, %p957_p12 }
 0x22d   : > { %v489_v3 = vpop.xlane.xlu1 %488 }
 0x22e   : > { %v490_v4 = vsub.f32 %v486_v2, %v489_v3 }
 0x230   : > { %v491_v5 = vmul.f32 1.442695, %v490_v4 }
 0x232   : > { %844 = vpow2.f32 %v491_v5 }
 0x238   : > { %v845_v6 = vpop.eup %844 }
 0x239   : > { %965 = shalt.err (!%p962_p10)
}
 0x23a   : > { %764 = dma.vmem_to_hbm [thread:$0]  (%p1187_p4), %s536_s19, 128, %s538_s29, %s1269_s22   ;;  %493 = vadd.xlane.f32.xlu2 %v845_v6 }
 0x23b   : > { %s1351_s9 = scalar_lea.vmem [#allocation8], %s1221_s16  ;;  %s523_s18 = sshll.u32 %s519_s21, 4  ;;  %s524_s18 = int_to_ptr.hbm [resolvable:$true] %s523_s18 }
 0x23c   : > { %s521_s17 = sshll.u32 %s1351_s9, 4  ;;  %s499_s28 = scalar_lea.sflag [#allocation4], %s1218_s30  ;;  %s522_s17 = int_to_ptr.vmem [resolvable:$true] %s521_s17 }
 0x23d   : > { %s980_s8 = sshra.s32 %s524_s18, 4  ;;  %s986_s3 = scalar_lea.hbm %s1336_s5, 16  ;;  %s981_s8 = int_to_ptr.hbm [resolvable:$true] %s980_s8 }
 0x23e   : > { %s982_s13 = scalar_lea.hbm %s981_s8, 8  ;;  %p987_p2 = scmp.lt.s32.totalorder %s981_s8, %s1336_s5 }
 0x23f   : > { %p983_p13 = scmp.ne.s32.totalorder %s981_s8, %s982_s13  ;;  %p988_p3 = scmp.lt.s32.totalorder %s986_s3, %s982_s13 }
 0x241   : > { %p984_p11 = pnand %p983_p13, %p1187_p4  ;;  %p989_p1 = por %p988_p3, %p987_p2 }
 0x243   : > { %p985_p0 = pneg %p984_p11 }
 0x245   : > { %p990_p5 = pnand %p989_p1, %p985_p0 }
 0x247   : > { %993 = shalt.err (!%p990_p5)
}
 0x248   : > { %763 = dma.vmem_to_hbm [thread:$0]  (%p1187_p4), %s522_s17, 128, %s524_s18, %s499_s28  }
 0x249   : > { %s547_s21 = scalar_lea.hbm %s1338_s7, %s1258_s15  ;;  %s370_s9 = scalar_lea.vmem [#allocation11], %s1221_s16 }
 0x24a   : > { %s549_s12 = sshll.u32 %s370_s9, 4  ;;  %s551_s14 = sshll.u32 %s547_s21, 4  ;;  %s550_s12 = int_to_ptr.vmem [resolvable:$true] %s549_s12  ;;  %s552_s14 = int_to_ptr.hbm [resolvable:$true] %s551_s14 }
 0x24b   : > { %s1008_s8 = sshra.s32 %s552_s14, 4  ;;  %s1014_s28 = scalar_lea.hbm %s1338_s7, 16  ;;  %s1009_s8 = int_to_ptr.hbm [resolvable:$true] %s1008_s8 }
 0x24c   : > { %s1010_s13 = scalar_lea.hbm %s1009_s8, 8  ;;  %p1015_p9 = scmp.lt.s32.totalorder %s1009_s8, %s1338_s7 }
 0x24d   : > { %p1011_p12 = scmp.ne.s32.totalorder %s1009_s8, %s1010_s13  ;;  %p1016_p10 = scmp.lt.s32.totalorder %s1014_s28, %s1010_s13 }
 0x24f   : > { %p1012_p7 = pnand %p1011_p12, %p1187_p4  ;;  %p1017_p13 = por %p1016_p10, %p1015_p9 }
 0x251   : > { %p1013_p8 = pneg %p1012_p7 }
 0x253   : > { %p1018_p11 = pnand %p1017_p13, %p1013_p8 }
 0x2ad   : > { %v494_v7 = vpop.xlane.xlu2 %493 }
 0x2ae   : > { %846 = vrcp.f32 %v494_v7 }
 0x2b4   : > { %v847_v8 = vpop.eup %846 }
 0x2b5   : > { %v496_v9 = vmul.f32 %v847_v8, %v845_v6 }
 0x2b7   : > { %497 = vst [vmem:[%s370_s9] sm:$0xff] %v496_v9 }
 0x2b8   : > { %1021 = shalt.err (!%p1018_p11)
}
 0x2b9   : > { %765 = dma.vmem_to_hbm [thread:$0]  (%p1187_p4), %s550_s12, 128, %s552_s14, %s1269_s22  }
 0x2ba PF: > { %s563_s3 = sand.u32 1, %s1056_s24   ;;  %p1352_p0 = scmp.ge.s32.totalorder %s1068_s27, 2 }
 0x2bb   : > { %s564_s4 = scalar_lea.sflag [#allocation4], %s563_s3 }
 0x2bc   : > { %p781_p2 = pnand %p1352_p0, %p1191_p6 }
 0x2be   : > { %p782_p3 = pneg %p781_p2 }
 0x2c0   : > { %1047 = dma.done.wait (%p782_p3), %s564_s4, 128  }
 0x2c1   : > { %1049 = vsyncadd (%p782_p3), %s564_s4, 4294967168  ;;  %s1353_s19 = sadd.s32 4294967294, %s1068_s27  }
 0x2c2   : > { %s573_s30 = sand.u32 1, %s1353_s19  }
 0x2c3   : > { %s574_s29 = scalar_lea.sflag [#allocation10], %s573_s30 }
 0x2c4   : > { %1051 = dma.done.wait (%p782_p3), %s574_s29, 256  }
 0x2c5   : > { %1053 = vsyncadd (%p782_p3), %s574_s29, 4294967040  ;;  %p25_p4 = scmp.ge.s32.totalorder %s1159_s20, 4   ;;  %s1354_s24 = smov %s1060_s25 }
 0x2c6   : > { %s1355_s25 = smov %s1064_s26  ;;  %s1356_s26 = smov %s1170_s23 }
 0x2c7   : > { %s1357_s27 = smov %s1159_s20  ;;  %27 = sbr.rel (!%p25_p4) target bundleno = 11 (0xb), region = 131 }
 0x2cc   :  { %590 = vsyncpa [#allocation3], 1 }
 0x2cd   :  { %592 = vsyncpa [#allocation3 + $0x1], 1 }
 0x2ce   :  { %593 = vsyncpa [#allocation6], 1 }
 0x2cf   :  { %594 = vsyncpa [#allocation4], 1 }
 0x2d0   :  { %596 = vsyncpa [#allocation4 + $0x1], 1 }
 0x2d1   :  { %597 = vsyncpa [#allocation10], 1 }
 0x2d2   :  { %599 = vsyncpa [#allocation10 + $0x1], 1 }

</bundles_post_ra>
